<compile_context>
chip_gen: v6e
topology: v6e:2x2x1
jax: 0.10.0
libtpu: 0.0.40
codegen_flags: <defaults>
</compile_context>

<pallas_src>
import math

import jax
import jax.numpy as jnp
from jax.experimental import pallas as pl
from jax.experimental.pallas import tpu as pltpu

_LANES = 512  # lane width per block (>=512 lanes ~ HBM roofline on all gens)


def _weighted_sum_kernel(pat_ref, x1_ref, x2_ref, x3_ref, o_ref, acc_ref):
    pid = pl.program_id(0)

    @pl.when(pid == 0)
    def _init():
        acc_ref[...] = jnp.zeros_like(acc_ref)

    # Same weight pattern for all three inputs -> 2 adds + 1 mul per element.
    s = x1_ref[...] + x2_ref[...] + x3_ref[...]
    acc_ref[...] += s * pat_ref[...]

    @pl.when(pid == pl.num_programs(0) - 1)
    def _finalize():
        o_ref[0, 0] = jnp.sum(acc_ref[...])


def model_forward(x1, x2, x3, weight):
    """Equivalent of Model(WeightedSumLinear(weight)).forward(x1, x2, x3).

    x1, x2, x3: (..., W) float32, weight: (W,) float32 -> scalar float32.
    """
    weight = weight.astype(jnp.float32)
    w = weight.shape[0]
    assert x1.shape == x2.shape == x3.shape
    assert x1.shape[-1] == w, "last dim must match weight length (broadcast rule)"

    total = x1.size
    bl = _LANES
    # Rows per block: multiple of 8 (sublane alignment) and block element
    # count a multiple of W, so flat_index % W (== last-axis index) gives the
    # same weight pattern in every block.
    br = 8 * (w // math.gcd(w, 8 * bl))
    block_elems = br * bl
    grid = max(1, -(-total // block_elems))
    padded = grid * block_elems
    rows = padded // bl

    def to_tiles(x):
        xf = x.reshape(-1)                 # free: contiguous flatten
        if padded != total:
            xf = jnp.pad(xf, (0, padded - total))   # zeros: contribute 0 to sum
        return xf.reshape(rows, bl)        # free: row-major split

    x1f, x2f, x3f = to_tiles(x1), to_tiles(x2), to_tiles(x3)

    # Hoisted weight lane pattern for one block: element f -> weight[f % W].
    pattern = jnp.tile(weight, block_elems // w).reshape(br, bl)

    data_spec = pl.BlockSpec((br, bl), lambda i: (i, 0))
    out = pl.pallas_call(
        _weighted_sum_kernel,
        out_shape=jax.ShapeDtypeStruct((1, 1), jnp.float32),
        grid=(grid,),
        in_specs=[
            # Constant block index -> fetched once, resident across the grid.
            pl.BlockSpec((br, bl), lambda i: (0, 0)),
            data_spec,
            data_spec,
            data_spec,
        ],
        out_specs=pl.BlockSpec(memory_space=pltpu.MemorySpace.SMEM),
        scratch_shapes=[pltpu.VMEM((br, bl), jnp.float32)],
        compiler_params=pltpu.CompilerParams(
            dimension_semantics=("arbitrary",)),
    )(pattern, x1f, x2f, x3f)
    return out[0, 0]


if __name__ == "__main__":
    key = jax.random.PRNGKey(0)
    k1, k2, k3, k4, k5, k6 = jax.random.split(key, 6)

    # Parameter matching torch.nn.Parameter(torch.tensor([1, 2, 3], float32)).
    weight = jnp.array([1.0, 2.0, 3.0], dtype=jnp.float32)

    # Small shape consistent with the module (last dim == len(weight) == 3).
    x1 = jax.random.normal(k1, (2, 4, 16, 3), dtype=jnp.float32)
    x2 = jax.random.normal(k2, (2, 4, 16, 3), dtype=jnp.float32)
    x3 = jax.random.normal(k3, (2, 4, 16, 3), dtype=jnp.float32)

    out = model_forward(x1, x2, x3, weight)
    jax.block_until_ready(out)
    ref = (x1 * weight).sum() + (x2 * weight).sum() + (x3 * weight).sum()
    assert jnp.allclose(out, ref, rtol=1e-3, atol=5e-2), (out, ref)

    # Larger shape exercising the multi-block grid, accumulator carry and
    # tail padding paths.
    y1 = jax.random.normal(k4, (4, 16, 130, 3), dtype=jnp.float32)
    y2 = jax.random.normal(k5, (4, 16, 130, 3), dtype=jnp.float32)
    y3 = jax.random.normal(k6, (4, 16, 130, 3), dtype=jnp.float32)
    out2 = model_forward(y1, y2, y3, weight)
    jax.block_until_ready(out2)
    ref2 = (y1 * weight).sum() + (y2 * weight).sum() + (y3 * weight).sum()
    assert jnp.allclose(out2, ref2, rtol=1e-3, atol=5e-2), (out2, ref2)

    print("KERNEL_OK")
</pallas_src>

<mosaic_0001>
module attributes {stable_mosaic.version = 11 : i64} {
  func.func @_weighted_sum_kernel(%arg0: i32, %arg1: memref<24x512xf32, #tpu.memory_space<vmem>>, %arg2: memref<24x512xf32, #tpu.memory_space<vmem>>, %arg3: memref<24x512xf32, #tpu.memory_space<vmem>>, %arg4: memref<24x512xf32, #tpu.memory_space<vmem>>, %arg5: memref<1x1xf32, #tpu.memory_space<smem>>, %arg6: memref<24x512xf32, #tpu.memory_space<vmem>>) attributes {dimension_semantics = [#tpu.dimension_semantics<arbitrary>], iteration_bounds = array<i64: 1>, scalar_prefetch = 0 : i64, scratch_operands = 1 : i64, tpu.core_type = #tpu.core_type<tc>, window_params = [{pipeline_mode = #tpu.pipeline_mode<synchronous>, transform_indices = @transform_0, window_bounds = array<i64: 24, 512>}, {transform_indices = @transform_1, window_bounds = array<i64: 24, 512>}, {transform_indices = @transform_2, window_bounds = array<i64: 24, 512>}, {transform_indices = @transform_3, window_bounds = array<i64: 24, 512>}, {transform_indices = @transform_4, window_bounds = array<i64: 1, 1>}]} {
    %c0_i32 = arith.constant 0 : i32
    %0 = arith.cmpi eq, %arg0, %c0_i32 : i32
    %1 = arith.extui %0 : i1 to i32
    %c0_i32_0 = arith.constant 0 : i32
    %2 = arith.cmpi ne, %1, %c0_i32_0 : i32
    scf.if %2 {
      %cst = arith.constant 0.000000e+00 : f32
      %16 = vector.broadcast %cst : f32 to vector<24x512xf32>
      %c0_14 = arith.constant 0 : index
      %c0_15 = arith.constant 0 : index
      %17 = vector.load %arg6[%c0_14, %c0_15] : memref<24x512xf32, #tpu.memory_space<vmem>>, vector<24x512xf32>
      tpu.vector_store %arg6[%c0_14, %c0_15], %16 {strides = array<i32>} : memref<24x512xf32, #tpu.memory_space<vmem>>, vector<24x512xf32>,
    } else {
    }
    %c0 = arith.constant 0 : index
    %c0_1 = arith.constant 0 : index
    %3 = vector.load %arg2[%c0, %c0_1] : memref<24x512xf32, #tpu.memory_space<vmem>>, vector<24x512xf32>
    %c0_2 = arith.constant 0 : index
    %c0_3 = arith.constant 0 : index
    %4 = vector.load %arg3[%c0_2, %c0_3] : memref<24x512xf32, #tpu.memory_space<vmem>>, vector<24x512xf32>
    %5 = arith.addf %3, %4 : vector<24x512xf32>
    %c0_4 = arith.constant 0 : index
    %c0_5 = arith.constant 0 : index
    %6 = vector.load %arg4[%c0_4, %c0_5] : memref<24x512xf32, #tpu.memory_space<vmem>>, vector<24x512xf32>
    %7 = arith.addf %5, %6 : vector<24x512xf32>
    %c0_6 = arith.constant 0 : index
    %c0_7 = arith.constant 0 : index
    %8 = vector.load %arg6[%c0_6, %c0_7] : memref<24x512xf32, #tpu.memory_space<vmem>>, vector<24x512xf32>
    %c0_8 = arith.constant 0 : index
    %c0_9 = arith.constant 0 : index
    %9 = vector.load %arg1[%c0_8, %c0_9] : memref<24x512xf32, #tpu.memory_space<vmem>>, vector<24x512xf32>
    %10 = arith.mulf %7, %9 : vector<24x512xf32>
    %11 = arith.addf %8, %10 : vector<24x512xf32>
    %c0_10 = arith.constant 0 : index
    %c0_11 = arith.constant 0 : index
    %12 = vector.load %arg6[%c0_10, %c0_11] : memref<24x512xf32, #tpu.memory_space<vmem>>, vector<24x512xf32>
    tpu.vector_store %arg6[%c0_10, %c0_11], %11 {strides = array<i32>} : memref<24x512xf32, #tpu.memory_space<vmem>>, vector<24x512xf32>,
    %c0_i32_12 = arith.constant 0 : i32
    %13 = arith.cmpi eq, %arg0, %c0_i32_12 : i32
    %14 = arith.extui %13 : i1 to i32
    %c0_i32_13 = arith.constant 0 : i32
    %15 = arith.cmpi ne, %14, %c0_i32_13 : i32
    scf.if %15 {
      %c0_14 = arith.constant 0 : index
      %c0_15 = arith.constant 0 : index
      %16 = vector.load %arg6[%c0_14, %c0_15] : memref<24x512xf32, #tpu.memory_space<vmem>>, vector<24x512xf32>
      %17 = vector.shape_cast %16 : vector<24x512xf32> to vector<1x24x512xf32>
      %cst = arith.constant dense<0.000000e+00> : vector<1xf32>
      %18 = vector.multi_reduction <add>, %17, %cst [1, 2] : vector<1x24x512xf32> to vector<1xf32>
      %19 = vector.shape_cast %18 : vector<1xf32> to vector<1x1x1xf32>
      %20 = vector.extract %19[0, 0, 0] : f32 from vector<1x1x1xf32>
      %c0_16 = arith.constant 0 : index
      %c0_17 = arith.constant 0 : index
      %21 = memref.load %arg5[%c0_16, %c0_17] : memref<1x1xf32, #tpu.memory_space<smem>>
      memref.store %20, %arg5[%c0_16, %c0_17] : memref<1x1xf32, #tpu.memory_space<smem>>
    } else {
    }
    return
  }
  func.func @transform_0(%arg0: i32) -> (i32, i32) {
    %c0_i32 = arith.constant 0 : i32
    %c0_i32_0 = arith.constant 0 : i32
    %c0_i32_1 = arith.constant 0 : i32
    return %c0_i32, %c0_i32_0 : i32, i32
  }
  func.func @transform_1(%arg0: i32) -> (i32, i32) {
    %c0_i32 = arith.constant 0 : i32
    %c0_i32_0 = arith.constant 0 : i32
    return %arg0, %c0_i32 : i32, i32
  }
  func.func @transform_2(%arg0: i32) -> (i32, i32) {
    %c0_i32 = arith.constant 0 : i32
    %c0_i32_0 = arith.constant 0 : i32
    return %arg0, %c0_i32 : i32, i32
  }
  func.func @transform_3(%arg0: i32) -> (i32, i32) {
    %c0_i32 = arith.constant 0 : i32
    %c0_i32_0 = arith.constant 0 : i32
    return %arg0, %c0_i32 : i32, i32
  }
  func.func @transform_4(%arg0: i32) -> (i32, i32) {
    %c0_i32 = arith.constant 0 : i32
    %c0_i32_0 = arith.constant 0 : i32
    %c0_i32_1 = arith.constant 0 : i32
    return %c0_i32, %c0_i32_0 : i32, i32
  }
}

</mosaic_0001>

<bundles_post_ra>
// kernel: tpu_custom_call.1
= control target key start
LH: loop header
LB: loop body
LE: loop exit
PB: predicated region body
PF: predicated region fallthrough
CT: control target
= control target key end

     0   :  { %9 = vsyncpa [#allocation4], 0  ;;  %s426_s0 = inlined_call_operand.hbm [shape: f32[24,512], index: 0, kind: input, shape index: {}]   ;;  %s427_s1 = inlined_call_operand.hbm [shape: f32[24,512], index: 1, kind: input, shape index: {}]   ;;  %s428_s2 = inlined_call_operand.hbm [shape: f32[24,512], index: 2, kind: input, shape index: {}]   ;;  %s429_s3 = inlined_call_operand.hbm [shape: f32[24,512], index: 3, kind: input, shape index: {}]   ;;  %s430_s4 = inlined_call_operand.hbm [shape: f32[1,1], index: 4, kind: output, shape index: {}]  }
   0x1   :  { %10 = vsyncpa [#allocation7], 0 }
   0x2   :  { %11 = vsyncpa [#allocation10], 0 }
   0x3   :  { %12 = vsyncpa [#allocation5], 0  ;;  %s367_s15 = smov [#allocation6]   ;;  %s368_s17 = smov [#allocation3]  }
   0x4   :  { %s30_s16 = sshll.u32 %s367_s15, 4  ;;  %s18_s18 = sshll.u32 %s368_s17, 4  ;;  %s31_s16 = int_to_ptr.vmem [resolvable:$true] %s30_s16  ;;  %s19_s18 = int_to_ptr.vmem [resolvable:$true] %s18_s18 }
   0x5   :  { %s279_s19 = scalar_lea.vmem %s31_s16, 1536  ;;  %p284_p1 = scmp.lt.s32.totalorder %s31_s16, %s31_s16 }
   0x6   :  { %p280_p0 = scmp.ne.s32.totalorder %s31_s16, %s279_s19  ;;  %p285_p2 = scmp.lt.s32.totalorder %s279_s19, %s279_s19 }
   0x8   :  { %p286_p3 = por %p285_p2, %p284_p1 }
   0xa   :  { %p287_p4 = pnand %p286_p3, %p280_p0 }
   0xc   :  { %290 = shalt.err (!%p287_p4)
}
   0xd   :  { %s369_s20 = smov 512   ;;  %s370_s21 = smov 32  }
   0xe   :  { %36 = dma.hbm_to_vmem [thread:$0]  %s427_s1, 1536, %s31_s16, [#allocation7], %s369_s20, %s369_s20, %s370_s21  }
   0xf   :  { %s299_s24 = scalar_lea.vmem %s19_s18, 1536  ;;  %p304_p6 = scmp.lt.s32.totalorder %s19_s18, %s19_s18 }
  0x10   :  { %p300_p5 = scmp.ne.s32.totalorder %s19_s18, %s299_s24  ;;  %p305_p7 = scmp.lt.s32.totalorder %s299_s24, %s299_s24 }
  0x12   :  { %p306_p8 = por %p305_p7, %p304_p6 }
  0x14   :  { %p307_p9 = pnand %p306_p8, %p300_p5 }
  0x16   :  { %310 = shalt.err (!%p307_p9)
}
  0x17   :  { %24 = dma.hbm_to_vmem [thread:$0]  %s426_s0, 1536, %s19_s18, [#allocation4], %s369_s20, %s369_s20, %s370_s21  }
  0x18   :  { %s371_s27 = smov [#allocation8]   ;;  %s372_s29 = smov [#allocation9]  }
  0x19   :  { %s42_s28 = sshll.u32 %s371_s27, 4  ;;  %s54_s30 = sshll.u32 %s372_s29, 4  ;;  %s43_s28 = int_to_ptr.vmem [resolvable:$true] %s42_s28  ;;  %s55_s30 = int_to_ptr.vmem [resolvable:$true] %s54_s30 }
  0x1a   :  { %s319_s1 = scalar_lea.vmem %s43_s28, 1536  ;;  %p324_p11 = scmp.lt.s32.totalorder %s43_s28, %s43_s28 }
  0x1b   :  { %p320_p10 = scmp.ne.s32.totalorder %s43_s28, %s319_s1  ;;  %p325_p12 = scmp.lt.s32.totalorder %s319_s1, %s319_s1 }
  0x1d   :  { %p326_p13 = por %p325_p12, %p324_p11 }
  0x1f   :  { %p327_p0 = pnand %p326_p13, %p320_p10 }
  0x21   :  { %330 = shalt.err (!%p327_p0)
}
  0x22   :  { %48 = dma.hbm_to_vmem [thread:$0]  %s428_s2, 1536, %s43_s28, [#allocation7], %s369_s20, %s369_s20, %s370_s21  }
  0x23   :  { %s339_s0 = scalar_lea.vmem %s55_s30, 1536  ;;  %p344_p2 = scmp.lt.s32.totalorder %s55_s30, %s55_s30 }
  0x24   :  { %p340_p1 = scmp.ne.s32.totalorder %s55_s30, %s339_s0  ;;  %p345_p3 = scmp.lt.s32.totalorder %s339_s0, %s339_s0 }
  0x26   :  { %p346_p4 = por %p345_p3, %p344_p2 }
  0x28   :  { %p347_p5 = pnand %p346_p4, %p340_p1 }
  0x2a   :  { %350 = shalt.err (!%p347_p5)
}
  0x2b   :  { %60 = dma.hbm_to_vmem [thread:$0]  %s429_s3, 1536, %s55_s30, [#allocation10], %s369_s20, %s369_s20, %s370_s21  }
  0x2c   :  { %359 = dma.done.wait [#allocation4], 1536  }
  0x2d   :  { %360 = vsyncadd [#allocation4], 4294965760 }
  0x2e   :  { %361 = dma.done.wait [#allocation7], 3072  }
  0x2f   :  { %362 = vsyncadd [#allocation7], 4294964224 }
  0x30   :  { %363 = dma.done.wait [#allocation10], 1536  }
  0x31   :  { %364 = vsyncadd [#allocation10], 4294965760  ;;  %v89_v0 = vld [vmem:[#allocation6] sm:$0xff]  ;;  %v90_v1 = vld [vmem:[#allocation6 + $0x8] sm:$0xff]  ;;  %s373_s3 = smov [#allocation11]  }
  0x32   :  { %v91_v2 = vld [vmem:[#allocation6 + $0x10] sm:$0xff]  ;;  %v92_v3 = vld [vmem:[#allocation6 + $0x18] sm:$0xff]  ;;  %v101_v4 = vld [vmem:[#allocation8] sm:$0xff] }
  0x33   :  { %v102_v5 = vld [vmem:[#allocation8 + $0x8] sm:$0xff]  ;;  %v103_v6 = vld [vmem:[#allocation8 + $0x10] sm:$0xff]  ;;  %v104_v7 = vld [vmem:[#allocation8 + $0x18] sm:$0xff]  ;;  %v113_v8 = vadd.f32 %v101_v4, %v89_v0 }
  0x34   :  { %v114_v9 = vadd.f32 %v102_v5, %v90_v1  ;;  %v115_v10 = vadd.f32 %v103_v6, %v91_v2  ;;  %v93_v11 = vld [vmem:[#allocation6 + $0x20] sm:$0xff]  ;;  %v94_v13 = vld [vmem:[#allocation6 + $0x28] sm:$0xff]  ;;  %v116_v15 = vadd.f32 %v104_v7, %v92_v3  ;;  %v127_v18 = vld [vmem:[#allocation9 + $0x10] sm:$0xff] }
  0x35   :  { %v105_v12 = vld [vmem:[#allocation8 + $0x20] sm:$0xff]  ;;  %v106_v14 = vld [vmem:[#allocation8 + $0x28] sm:$0xff]  ;;  %v95_v19 = vld [vmem:[#allocation6 + $0x30] sm:$0xff] }
  0x36   :  { %v125_v16 = vld [vmem:[#allocation9] sm:$0xff]  ;;  %v126_v17 = vld [vmem:[#allocation9 + $0x8] sm:$0xff]  ;;  %v107_v20 = vld [vmem:[#allocation8 + $0x30] sm:$0xff]  ;;  %v117_v21 = vadd.f32 %v105_v12, %v93_v11  ;;  %v139_v25 = vadd.f32 %v127_v18, %v115_v10  ;;  %v118_v29 = vadd.f32 %v106_v14, %v94_v13 }
  0x37   :  { %v128_v22 = vld [vmem:[#allocation9 + $0x18] sm:$0xff]  ;;  %v137_v23 = vadd.f32 %v125_v16, %v113_v8  ;;  %v138_v24 = vadd.f32 %v126_v17, %v114_v9  ;;  %v129_v26 = vld [vmem:[#allocation9 + $0x20] sm:$0xff]  ;;  %v130_v30 = vld [vmem:[#allocation9 + $0x28] sm:$0xff]  ;;  %v119_v32 = vadd.f32 %v107_v20, %v95_v19 }
  0x38   :  { %v96_v27 = vld [vmem:[#allocation6 + $0x38] sm:$0xff]  ;;  %v140_v31 = vadd.f32 %v128_v22, %v116_v15  ;;  %v161_v33 = vld [vmem:[#allocation3] sm:$0xff]  ;;  %v162_v34 = vld [vmem:[#allocation3 + $0x8] sm:$0xff]  ;;  %v141_v37 = vadd.f32 %v129_v26, %v117_v21  ;;  %v142_v47 = vadd.f32 %v130_v30, %v118_v29 }
  0x39   :  { %v108_v28 = vld [vmem:[#allocation8 + $0x38] sm:$0xff]  ;;  %v163_v35 = vld [vmem:[#allocation3 + $0x10] sm:$0xff]  ;;  %v97_v36 = vld [vmem:[#allocation6 + $0x40] sm:$0xff]  ;;  %v173_v39 = vmul.f32 %v161_v33, %v137_v23  ;;  %v174_v40 = vmul.f32 %v162_v34, %v138_v24 }
  0x3a   :  { %v164_v38 = vld [vmem:[#allocation3 + $0x18] sm:$0xff]  ;;  %v175_v41 = vmul.f32 %v163_v35, %v139_v25  ;;  %v109_v42 = vld [vmem:[#allocation8 + $0x40] sm:$0xff]  ;;  %v131_v43 = vld [vmem:[#allocation9 + $0x30] sm:$0xff]  ;;  %v120_v46 = vadd.f32 %v108_v28, %v96_v27 }
  0x3b   :  { %v165_v44 = vld [vmem:[#allocation3 + $0x20] sm:$0xff]  ;;  %v98_v45 = vld [vmem:[#allocation6 + $0x48] sm:$0xff]  ;;  %v176_v48 = vmul.f32 %v164_v38, %v140_v31  ;;  %v224_v49 = vadd.f32 %v174_v40, %v173_v39  ;;  %v132_v51 = vld [vmem:[#allocation9 + $0x38] sm:$0xff]  ;;  %v121_v54 = vadd.f32 %v109_v42, %v97_v36  ;;  %v143_v55 = vadd.f32 %v131_v43, %v119_v32 }
  0x3c   :  { %v110_v50 = vld [vmem:[#allocation8 + $0x48] sm:$0xff]  ;;  %v99_v53 = vld [vmem:[#allocation6 + $0x50] sm:$0xff]  ;;  %v177_v56 = vmul.f32 %v165_v44, %v141_v37  ;;  %v133_v59 = vld [vmem:[#allocation9 + $0x40] sm:$0xff]  ;;  %v144_v63 = vadd.f32 %v132_v51, %v120_v46 }
  0x3d   :  { %v166_v52 = vld [vmem:[#allocation3 + $0x28] sm:$0xff]  ;;  %v225_v57 = vadd.f32 %v224_v49, %v175_v41  ;;  %v111_v58 = vld [vmem:[#allocation8 + $0x50] sm:$0xff]  ;;  %v100_v61 = vld [vmem:[#allocation6 + $0x58] sm:$0xff]  ;;  %v122_v62 = vadd.f32 %v110_v50, %v98_v45  ;;  %v145_v6 = vadd.f32 %v133_v59, %v121_v54 }
  0x3e   :  { %v167_v60 = vld [vmem:[#allocation3 + $0x30] sm:$0xff]  ;;  %v178_v0 = vmul.f32 %v166_v52, %v142_v47  ;;  %v112_v2 = vld [vmem:[#allocation8 + $0x58] sm:$0xff]  ;;  %v134_v3 = vld [vmem:[#allocation9 + $0x48] sm:$0xff]  ;;  %v123_v5 = vadd.f32 %v111_v58, %v99_v53 }
  0x3f   :  { %v226_v1 = vadd.f32 %v225_v57, %v176_v48  ;;  %v168_v4 = vld [vmem:[#allocation3 + $0x38] sm:$0xff]  ;;  %v179_v7 = vmul.f32 %v167_v60, %v143_v55  ;;  %v135_v9 = vld [vmem:[#allocation9 + $0x50] sm:$0xff]  ;;  %v169_v10 = vld [vmem:[#allocation3 + $0x40] sm:$0xff]  ;;  %v124_v11 = vadd.f32 %v112_v2, %v100_v61  ;;  %v146_v12 = vadd.f32 %v134_v3, %v122_v62 }
  0x40   :  { %v180_v13 = vmul.f32 %v168_v4, %v144_v63  ;;  %v136_v15 = vld [vmem:[#allocation9 + $0x58] sm:$0xff]  ;;  %v170_v16 = vld [vmem:[#allocation3 + $0x48] sm:$0xff]  ;;  %v147_v17 = vadd.f32 %v135_v9, %v123_v5  ;;  %v181_v18 = vmul.f32 %v169_v10, %v145_v6  ;;  %v171_v20 = vld [vmem:[#allocation3 + $0x50] sm:$0xff] }
  0x41   :  { %v227_v8 = vadd.f32 %v226_v1, %v177_v56  ;;  %v148_v21 = vadd.f32 %v136_v15, %v124_v11  ;;  %v182_v22 = vmul.f32 %v170_v16, %v146_v12  ;;  %v172_v24 = vld [vmem:[#allocation3 + $0x58] sm:$0xff] }
  0x42   :  { %v183_v25 = vmul.f32 %v171_v20, %v147_v17 }
  0x43   :  { %v228_v14 = vadd.f32 %v227_v8, %v178_v0  ;;  %v184_v27 = vmul.f32 %v172_v24, %v148_v21 }
  0x45   :  { %v229_v19 = vadd.f32 %v228_v14, %v179_v7 }
  0x47   :  { %v230_v23 = vadd.f32 %v229_v19, %v180_v13 }
  0x49   :  { %v231_v26 = vadd.f32 %v230_v23, %v181_v18 }
  0x4b   :  { %v232_v28 = vadd.f32 %v231_v26, %v182_v22 }
  0x4d   :  { %v233_v29 = vadd.f32 %v232_v28, %v183_v25 }
  0x4f   :  { %v234_v30 = vadd.f32 %v233_v29, %v184_v27 }
  0x51   :  { %235 = vadd.xlane.f32.xlu0 %v234_v30 }
  0xda   :  { %v236_v31 = vpop.xlane.xlu0 %235 }
  0xdb   :  { %v237_v32 = vrot.slane %v236_v31, 4 }
  0xdd   :  { %v238_v33 = vadd.f32 %v237_v32, %v236_v31 }
  0xdf   :  { %v239_v34 = vrot.slane %v238_v33, 2 }
  0xe1   :  { %v240_v35 = vadd.f32 %v239_v34, %v238_v33 }
  0xe3   :  { %v241_v36 = vrot.slane %v240_v35, 1 }
  0xe5   :  { %v242_v37 = vadd.f32 %v241_v36, %v240_v35 }
  0xe7   :  { %262 = vpush %v242_v37 }
 0x118   :  { %s263_s2 = spop %262 }
 0x119   :  { %245 = sst [smem:[#allocation11]] %s263_s2 }
 0x11a   :  { %253 = dma.smem_to_hbm %s373_s3, 16, %s430_s4, [#allocation5]  }
 0x11b   :  { %365 = dma.done.wait [#allocation5], 16  }
 0x11c   :  { %366 = vsyncadd [#allocation5], 4294967280 }
 0x11d   :  { %257 = sfence }
 0x11e   :  { %258 = vsyncpa [#allocation4], 1 }
 0x11f   :  { %259 = vsyncpa [#allocation7], 1 }
 0x120   :  { %260 = vsyncpa [#allocation10], 1 }
 0x121   :  { %261 = vsyncpa [#allocation5], 1 }

</bundles_post_ra>
